<compile_context>
chip_gen: v6e
topology: v6e:2x2x1
jax: 0.10.0
libtpu: 0.0.40
codegen_flags: <defaults>
</compile_context>

<pallas_src>
import functools

import jax
import jax.numpy as jnp
import numpy as np
from jax.experimental import pallas as pl
from jax.experimental.pallas import tpu as pltpu


def _pe_kernel(seed_ref, x_ref, pe_ref, o_ref, *,
               dropout_p: float, block_rows: int, n_cols: int):
    # seed_ref : SMEM (1,) int32
    # x_ref    : VMEM (block_rows, n_cols)
    # pe_ref   : VMEM (1, n_cols)
    # o_ref    : VMEM (block_rows, n_cols)
    x = x_ref[...]                      # (Bb, LD)
    pe = pe_ref[...]                    # (1, LD) -> broadcast over rows
    y = x + pe

    if dropout_p > 0.0:
        keep_prob = 1.0 - dropout_p
        # Integer-domain keep test: bits < keep_prob * 2^32  (no float convert).
        thresh = jnp.uint32(min(0xFFFFFFFF, int(round(keep_prob * 4294967296.0))))

        # Global element index (tiling-invariant), hashed with the seed.
        row = jax.lax.broadcasted_iota(jnp.int32, y.shape, 0)
        col = jax.lax.broadcasted_iota(jnp.int32, y.shape, 1)
        base = pl.program_id(0) * block_rows
        gidx = (base + row) * n_cols + col                    # int32, wraps OK
        h = gidx.astype(jnp.uint32) ^ seed_ref[0].astype(jnp.uint32)
        # splitmix32-style mix (pure VPU integer ops; portable to interpret mode)
        h = (h ^ (h >> 16)) * jnp.uint32(0x7FEB352D)
        h = (h ^ (h >> 15)) * jnp.uint32(0x846CA68B)
        h = h ^ (h >> 16)

        keep = h < thresh
        y = jnp.where(keep, y * jnp.float32(1.0 / keep_prob), jnp.float32(0.0))

    o_ref[...] = y.astype(o_ref.dtype)


def make_positional_encoding_table(d_model: int, word_pad_len: int) -> jnp.ndarray:
    """Builds the same pe table as the PyTorch __init__ (float32)."""
    pos = np.arange(word_pad_len, dtype=np.float64)[:, None]        # (L, 1)
    i = np.arange(d_model, dtype=np.int64)[None, :]                  # (1, D)
    angle = pos / np.power(10000.0, (i // 2 * 2.0) / d_model)        # (L, D)
    pe = np.array(angle, dtype=np.float64)
    pe[:, 0::2] = np.sin(pe[:, 0::2])
    pe[:, 1::2] = np.cos(pe[:, 1::2])
    return jnp.asarray(pe, dtype=jnp.float32)


def positional_encoding(x: jnp.ndarray,
                        pe: jnp.ndarray,
                        dropout_p: float = 0.0,
                        seed: int = 0) -> jnp.ndarray:
    """x: (B, L, D) float32, pe: (L, D) float32 -> (B, L, D) float32."""
    B, L, D = x.shape
    assert pe.shape == (L, D)
    LD = L * D

    # Lane-dense, coarse-grained layout: flatten (L, D) into the lane axis.
    x2 = x.reshape(B, LD)
    pe2 = pe.reshape(1, LD)
    seed_arr = jnp.array([seed], dtype=jnp.int32)

    # Pick a row-block so each block is ~2 MiB (fits v5e's 16 MiB scoped VMEM
    # with double-buffered in+out; also well under v7x's tighter budget).
    row_bytes = LD * x.dtype.itemsize
    bb = max(1, (2 * 1024 * 1024) // row_bytes)
    if bb >= B:
        bb = B                           # whole batch in one block
    else:
        bb = max(8, (bb // 8) * 8)       # keep second-to-last dim 8-aligned
    grid = (pl.cdiv(B, bb),)

    kernel = functools.partial(_pe_kernel, dropout_p=float(dropout_p),
                               block_rows=bb, n_cols=LD)

    out2 = pl.pallas_call(
        kernel,
        out_shape=jax.ShapeDtypeStruct((B, LD), x.dtype),
        grid=grid,
        in_specs=[
            pl.BlockSpec(memory_space=pltpu.MemorySpace.SMEM),   # seed (scalar)
            pl.BlockSpec((bb, LD), lambda i: (i, 0)),            # embeddings rows
            pl.BlockSpec((1, LD), lambda i: (0, 0)),             # pe row (resident)
        ],
        out_specs=pl.BlockSpec((bb, LD), lambda i: (i, 0)),
        compiler_params=pltpu.CompilerParams(
            dimension_semantics=("parallel",)),                  # independent rows
    )(seed_arr, x2, pe2)

    return out2.reshape(B, L, D)


if __name__ == "__main__":
    # Small shapes consistent with the module: batch=2, word_pad_len=8, d_model=32
    B, L, D = 2, 8, 32
    dropout_rate = 0.1

    key = jax.random.PRNGKey(0)
    x = jax.random.normal(key, (B, L, D), dtype=jnp.float32)
    pe = make_positional_encoding_table(D, L)

    # Deterministic check (dropout disabled -> must equal x + pe exactly).
    out_eval = positional_encoding(x, pe, dropout_p=0.0)
    out_eval = jax.block_until_ready(out_eval)
    ref = np.asarray(x) + np.asarray(pe)[None, :, :]
    np.testing.assert_allclose(np.asarray(out_eval), ref, rtol=1e-6, atol=1e-6)

    # Training-mode path (in-kernel hash-based dropout, deterministic per seed).
    out_train = positional_encoding(x, pe, dropout_p=dropout_rate, seed=1234)
    out_train = jax.block_until_ready(out_train)
    out_train_np = np.asarray(out_train)
    assert out_train_np.shape == (B, L, D)
    # Kept positions are exactly ref / (1 - p); dropped positions are exactly 0.
    kept = out_train_np != 0.0
    np.testing.assert_allclose(out_train_np[kept],
                               (ref / (1.0 - dropout_rate))[kept],
                               rtol=1e-5, atol=1e-5)
    # Dropout should not zero out a wildly wrong fraction of elements.
    drop_frac = 1.0 - kept.mean()
    assert drop_frac < 0.5, f"unexpected drop fraction {drop_frac}"

    print("KERNEL_OK")
</pallas_src>

<mosaic_0001>
module attributes {stable_mosaic.version = 11 : i64} {
  func.func @_pe_kernel(%arg0: i32, %arg1: memref<1xi32, #tpu.memory_space<smem>>, %arg2: memref<2x256xf32, #tpu.memory_space<vmem>>, %arg3: memref<1x256xf32, #tpu.memory_space<vmem>>, %arg4: memref<2x256xf32, #tpu.memory_space<vmem>>) attributes {dimension_semantics = [#tpu.dimension_semantics<parallel>], iteration_bounds = array<i64: 1>, scalar_prefetch = 0 : i64, scratch_operands = 0 : i64, tpu.core_type = #tpu.core_type<tc>, window_params = [{transform_indices = @transform_0, window_bounds = array<i64: 1>}, {transform_indices = @transform_1, window_bounds = array<i64: 2, 256>}, {pipeline_mode = #tpu.pipeline_mode<synchronous>, transform_indices = @transform_2, window_bounds = array<i64: 1, 256>}, {transform_indices = @transform_3, window_bounds = array<i64: 2, 256>}]} {
    %c0 = arith.constant 0 : index
    %c0_0 = arith.constant 0 : index
    %0 = vector.load %arg2[%c0, %c0_0] : memref<2x256xf32, #tpu.memory_space<vmem>>, vector<2x256xf32>
    %c0_1 = arith.constant 0 : index
    %c0_2 = arith.constant 0 : index
    %1 = vector.load %arg3[%c0_1, %c0_2] : memref<1x256xf32, #tpu.memory_space<vmem>>, vector<1x256xf32>
    %2 = vector.broadcast %1 : vector<1x256xf32> to vector<2x256xf32>
    %3 = arith.addf %0, %2 : vector<2x256xf32>
    %c0_3 = arith.constant 0 : index
    %c0_4 = arith.constant 0 : index
    %4 = vector.load %arg4[%c0_3, %c0_4] : memref<2x256xf32, #tpu.memory_space<vmem>>, vector<2x256xf32>
    tpu.vector_store %arg4[%c0_3, %c0_4], %3 {strides = array<i32>} : memref<2x256xf32, #tpu.memory_space<vmem>>, vector<2x256xf32>,
    return
  }
  func.func @transform_0(%arg0: i32) -> i32 {
    %c0_i32 = arith.constant 0 : i32
    %c0_i32_0 = arith.constant 0 : i32
    return %c0_i32 : i32
  }
  func.func @transform_1(%arg0: i32) -> (i32, i32) {
    %c0_i32 = arith.constant 0 : i32
    %c0_i32_0 = arith.constant 0 : i32
    return %arg0, %c0_i32 : i32, i32
  }
  func.func @transform_2(%arg0: i32) -> (i32, i32) {
    %c0_i32 = arith.constant 0 : i32
    %c0_i32_0 = arith.constant 0 : i32
    %c0_i32_1 = arith.constant 0 : i32
    return %c0_i32, %c0_i32_0 : i32, i32
  }
  func.func @transform_3(%arg0: i32) -> (i32, i32) {
    %c0_i32 = arith.constant 0 : i32
    %c0_i32_0 = arith.constant 0 : i32
    return %arg0, %c0_i32 : i32, i32
  }
}

</mosaic_0001>

<bundles_post_ra>
// kernel: tpu_custom_call.1
= control target key start
LH: loop header
LB: loop body
LE: loop exit
PB: predicated region body
PF: predicated region fallthrough
CT: control target
= control target key end

     0   :  { %9 = vsyncpa [#allocation4], 0  ;;  %s144_s0 = inlined_call_operand.<no memory space> [shape: s32[1], index: 0, kind: input, shape index: {}]   ;;  %s145_s1 = inlined_call_operand.hbm [shape: f32[2,256], index: 1, kind: input, shape index: {}]   ;;  %s146_s2 = inlined_call_operand.vmem [shape: f32[1,256], index: 2, kind: input, shape index: {}]   ;;  %s147_s3 = inlined_call_operand.hbm [shape: f32[2,256], index: 3, kind: output, shape index: {}]  }
   0x1   :  { %10 = vsyncpa [#allocation5], 0  ;;  %s112_s12 = smov [#allocation3]  }
   0x2   :  { %s19_s13 = sshll.u32 %s112_s12, 4  ;;  %s20_s13 = int_to_ptr.vmem [resolvable:$true] %s19_s13 }
   0x3   :  { %s76_s14 = scalar_lea.vmem %s20_s13, 64  ;;  %p81_p1 = scmp.lt.s32.totalorder %s20_s13, %s20_s13 }
   0x4   :  { %p77_p0 = scmp.ne.s32.totalorder %s20_s13, %s76_s14  ;;  %p82_p2 = scmp.lt.s32.totalorder %s76_s14, %s76_s14 }
   0x6   :  { %p83_p3 = por %p82_p2, %p81_p1 }
   0x8   :  { %p84_p4 = pnand %p83_p3, %p77_p0 }
   0xa   :  { %87 = shalt.err (!%p84_p4)
}
   0xb   :  { %22 = dma.hbm_to_vmem [thread:$0]  %s145_s1, 64, %s20_s13, [#allocation4]  }
   0xc   :  { %108 = dma.done.wait [#allocation4], 64  }
   0xd   :  { %109 = vsyncadd [#allocation4], 4294967232  ;;  %v31_v0 = vlaneseq  ;;  %v113_v1 = vmov 1983009808   ;;  %v29_v7 = vld [vmem:[%s146_s2] sm:$0x3] }
   0xe   :  { %v41_v2 = vunpack.c.l.s4 %v113_v1  ;;  %v28_v12 = vld [vmem:[#allocation3] sm:$0xf]  ;;  %s114_s18 = smov [#allocation6]  }
   0xf   :  { %v32_v3 = vshrl.u32 %v31_v0, 7  ;;  %s56_s1 = sshll.u32 %s114_s18, 4  ;;  %s57_s1 = int_to_ptr.vmem [resolvable:$true] %s56_s1 }
  0x10   :  { %v42_v6 = vunpack.c.0.s8 %v41_v2  ;;  %s88_s19 = scalar_lea.vmem %s57_s1, 64  ;;  %p93_p6 = scmp.lt.s32.totalorder %s57_s1, %s57_s1 }
  0x11   :  { %v33_v4 = vsub.s32 0, %v32_v3  ;;  %v37_v5 = vsub.s32 1, %v32_v3  ;;  %p89_p5 = scmp.ne.s32.totalorder %s57_s1, %s88_s19  ;;  %p94_p7 = scmp.lt.s32.totalorder %s88_s19, %s88_s19 }
  0x12   :  { %v45_v10 = vsub.s32 %v42_v6, %v32_v3 }
  0x13   :  { %v34_v8 = vrot.slane %v29_v7, %v33_v4  ;;  %v38_v9 = vrot.slane %v29_v7, %v37_v5  ;;  %p95_p8 = por %p94_p7, %p93_p6 }
  0x15   :  { %v39_v11 = vcombine.low %v34_v8, %v38_v9  ;;  %p96_p9 = pnand %p95_p8, %p89_p5 }
  0x17   :  { %v46_v13 = vrot.slane %v39_v11, %v45_v10 }
  0x19   :  { %v48_v14 = vadd.f32 %v46_v13, %v28_v12 }
  0x1b   :  { %49 = vst [vmem:[#allocation6] sm:$0xf] %v48_v14 }
  0x1c   :  { %99 = shalt.err (!%p96_p9)
}
  0x1d   :  { %59 = dma.vmem_to_hbm [thread:$0]  %s57_s1, 64, %s147_s3, [#allocation5]  }
  0x1e   :  { %110 = dma.done.wait [#allocation5], 64  }
  0x1f   :  { %111 = vsyncadd [#allocation5], 4294967232 }
  0x20   :  { %63 = vsyncpa [#allocation4], 1 }
  0x21   :  { %64 = vsyncpa [#allocation5], 1 }

</bundles_post_ra>
